<compile_context>
chip_gen: v6e
topology: v6e:2x2x1
jax: 0.10.0
libtpu: 0.0.40
codegen_flags: <defaults>
</compile_context>

<pallas_src>
import functools
import math

import jax
import jax.numpy as jnp
from jax import lax
from jax.experimental import pallas as pl
from jax.experimental.pallas import tpu as pltpu


def _mha_kernel(x_ref, wq_ref, bq_ref, wk_ref, bk_ref, wv_ref, bv_ref,
                wo_ref, bo_ref, o_ref, k_buf, v_buf, ctx_buf,
                *, n_heads: int, d_k: int, tq: int):
    """Grid: (batch, query-block).

    x_ref   : (1, S, E)  full-sequence input (block index constant over qi)
    wq/bq, wk/bk, wv/bv, wo/bo : (E, E) / (1, E) projection weights & biases
    o_ref   : (1, TQ, E) output tile
    k_buf/v_buf : (n_heads, S, d_k) bf16 VMEM scratch (persist across qi)
    ctx_buf : (TQ, E) f32 VMEM scratch for the concatenated per-head context
    """
    qi = pl.program_id(1)
    inv_scale = 1.0 / math.sqrt(d_k)

    # ---- K/V projection: once per batch element, stored head-major in bf16 --
    @pl.when(qi == 0)
    def _():
        xf = x_ref[0]                                                  # (S, E)
        k = jnp.dot(xf, wk_ref[...],
                    preferred_element_type=jnp.float32) + bk_ref[...]  # (S, E)
        v = jnp.dot(xf, wv_ref[...],
                    preferred_element_type=jnp.float32) + bv_ref[...]  # (S, E)
        for h in range(n_heads):                     # static, small
            lo = h * d_k
            k_buf[h] = k[:, lo:lo + d_k].astype(k_buf.dtype)
            v_buf[h] = v[:, lo:lo + d_k].astype(v_buf.dtype)

    # ---- Q projection for this query tile (scale folded in once) ------------
    start = pl.multiple_of(qi * tq, tq)
    xq = x_ref[0, pl.ds(start, tq), :]                                 # (TQ, E)
    q = (jnp.dot(xq, wq_ref[...], preferred_element_type=jnp.float32)
         + bq_ref[...]) * inv_scale                                    # (TQ, E) f32

    # ---- per-head attention into the (TQ, E) context slab --------------------
    for h in range(n_heads):
        lo = h * d_k
        qh = q[:, lo:lo + d_k].astype(jnp.bfloat16)                    # (TQ, d_k)
        kh = k_buf[h]                                                  # (S, d_k) bf16
        vh = v_buf[h]                                                  # (S, d_k) bf16

        # Q @ K^T without materializing a transpose: contract last dims.
        scores = lax.dot_general(
            qh, kh, dimension_numbers=(((1,), (1,)), ((), ())),
            preferred_element_type=jnp.float32)                       # (TQ, S)

        m = jnp.max(scores, axis=-1, keepdims=True)
        p = jnp.exp(scores - m)
        denom = jnp.sum(p, axis=-1, keepdims=True)
        attn = (p * pl.reciprocal(denom, approx=True)).astype(jnp.bfloat16)

        ctx_buf[:, lo:lo + d_k] = jnp.dot(
            attn, vh, preferred_element_type=jnp.float32)              # (TQ, d_k)

    # ---- single full-depth output projection ---------------------------------
    out = jnp.dot(ctx_buf[...], wo_ref[...],
                  preferred_element_type=jnp.float32) + bo_ref[...]    # (TQ, E)
    o_ref[0] = out.astype(o_ref.dtype)


def multi_head_attention(x, params, *, n_heads: int, q_block: int = 128):
    """x: (B, S, E) float32. params: dict of (E,E) weights and (1,E) biases."""
    B, S, E = x.shape
    assert E % n_heads == 0, "embed_dimension must be divisible by n_heads"
    d_k = E // n_heads

    tq = min(q_block, S)
    if S % tq != 0:
        # keep the in-kernel query slice in-bounds; fall back to one tile.
        tq = S
    nq = S // tq

    kernel = functools.partial(_mha_kernel, n_heads=n_heads, d_k=d_k, tq=tq)

    # Weights / biases never change over the grid -> single-buffer them.
    def _const_spec(shape):
        return pl.BlockSpec(shape, lambda b, qi: (0, 0),
                            pipeline_mode=pl.Buffered(1))

    # Actual VMEM residency (with headroom) for the compiler scoped-VMEM limit.
    est_vmem = (
        2 * S * E * 4            # x block, double-buffered f32
        + 2 * tq * E * 4         # output block, double-buffered f32
        + 2 * S * E * 2          # K/V scratch, bf16, head-major
        + tq * E * 4             # context slab f32
        + 4 * E * E * 4          # four weight matrices, single-buffered
        + 4 * E * 4              # biases
    )
    vmem_limit = int(min(100 * 2 ** 20, max(8 * 2 ** 20, 2 * est_vmem)))

    cost = pl.CostEstimate(
        flops=8 * B * S * E * E + 4 * B * S * S * E,
        transcendentals=B * n_heads * S * S,
        bytes_accessed=4 * (2 * B * S * E + 4 * E * E + 4 * E),  # x read + out write + weights
    )

    return pl.pallas_call(
        kernel,
        out_shape=jax.ShapeDtypeStruct((B, S, E), x.dtype),
        grid=(B, nq),
        in_specs=[
            pl.BlockSpec((1, S, E), lambda b, qi: (b, 0, 0)),   # x (full seq)
            _const_spec((E, E)), _const_spec((1, E)),           # wq, bq
            _const_spec((E, E)), _const_spec((1, E)),           # wk, bk
            _const_spec((E, E)), _const_spec((1, E)),           # wv, bv
            _const_spec((E, E)), _const_spec((1, E)),           # wo, bo
        ],
        out_specs=pl.BlockSpec((1, tq, E), lambda b, qi: (b, qi, 0)),
        scratch_shapes=[
            pltpu.VMEM((n_heads, S, d_k), jnp.bfloat16),        # K, head-major
            pltpu.VMEM((n_heads, S, d_k), jnp.bfloat16),        # V, head-major
            pltpu.VMEM((tq, E), jnp.float32),                   # context slab
        ],
        compiler_params=pltpu.CompilerParams(
            dimension_semantics=("parallel", "arbitrary"),
            vmem_limit_bytes=vmem_limit,
        ),
        cost_estimate=cost,
    )(x, params["wq"], params["bq"], params["wk"], params["bk"],
      params["wv"], params["bv"], params["wo"], params["bo"])


def _reference(x, params, *, n_heads: int):
    """Pure-JAX reference mirroring the PyTorch forward (f32 throughout)."""
    B, S, E = x.shape
    d_k = E // n_heads
    q = x @ params["wq"] + params["bq"][0]
    k = x @ params["wk"] + params["bk"][0]
    v = x @ params["wv"] + params["bv"][0]
    q = q.reshape(B, S, n_heads, d_k).transpose(0, 2, 1, 3)
    k = k.reshape(B, S, n_heads, d_k).transpose(0, 2, 1, 3)
    v = v.reshape(B, S, n_heads, d_k).transpose(0, 2, 1, 3)
    scores = jnp.einsum("bhqd,bhkd->bhqk", q, k) / (d_k ** 0.5)
    attn = jax.nn.softmax(scores, axis=-1)
    ctx = jnp.einsum("bhqk,bhkd->bhqd", attn, v)
    ctx = ctx.transpose(0, 2, 1, 3).reshape(B, S, E)
    return ctx @ params["wo"] + params["bo"][0]


if __name__ == "__main__":
    B, S, E = 2, 8, 32
    n_heads = 4

    key = jax.random.PRNGKey(0)
    keys = jax.random.split(key, 9)
    scale = 1.0 / math.sqrt(E)
    params = {
        "wq": jax.random.normal(keys[0], (E, E), jnp.float32) * scale,
        "bq": jax.random.normal(keys[1], (1, E), jnp.float32) * 0.01,
        "wk": jax.random.normal(keys[2], (E, E), jnp.float32) * scale,
        "bk": jax.random.normal(keys[3], (1, E), jnp.float32) * 0.01,
        "wv": jax.random.normal(keys[4], (E, E), jnp.float32) * scale,
        "bv": jax.random.normal(keys[5], (1, E), jnp.float32) * 0.01,
        "wo": jax.random.normal(keys[6], (E, E), jnp.float32) * scale,
        "bo": jax.random.normal(keys[7], (1, E), jnp.float32) * 0.01,
    }
    x = jax.random.normal(keys[8], (B, S, E), jnp.float32)

    out = multi_head_attention(x, params, n_heads=n_heads)
    out = jax.block_until_ready(out)

    ref = _reference(x, params, n_heads=n_heads)
    assert out.shape == (B, S, E)
    # Tolerance accounts for bf16 MXU operands (Q/K, probs/V) and the approx
    # (EUP) reciprocal in the softmax normalization.
    assert jnp.allclose(out, ref, atol=5e-2, rtol=5e-2), "mismatch vs reference"

    print("KERNEL_OK")
</pallas_src>

<mosaic_0001>
module attributes {stable_mosaic.version = 11 : i64} {
  func.func @_mha_kernel(%arg0: i32, %arg1: i32, %arg2: memref<1x8x32xf32, #tpu.memory_space<vmem>>, %arg3: memref<32x32xf32, #tpu.memory_space<vmem>>, %arg4: memref<1x32xf32, #tpu.memory_space<vmem>>, %arg5: memref<32x32xf32, #tpu.memory_space<vmem>>, %arg6: memref<1x32xf32, #tpu.memory_space<vmem>>, %arg7: memref<32x32xf32, #tpu.memory_space<vmem>>, %arg8: memref<1x32xf32, #tpu.memory_space<vmem>>, %arg9: memref<32x32xf32, #tpu.memory_space<vmem>>, %arg10: memref<1x32xf32, #tpu.memory_space<vmem>>, %arg11: memref<1x8x32xf32, #tpu.memory_space<vmem>>, %arg12: memref<4x8x8xbf16, #tpu.memory_space<vmem>>, %arg13: memref<4x8x8xbf16, #tpu.memory_space<vmem>>, %arg14: memref<8x32xf32, #tpu.memory_space<vmem>>) attributes {dimension_semantics = [#tpu.dimension_semantics<parallel>, #tpu.dimension_semantics<arbitrary>], iteration_bounds = array<i64: 2, 1>, scalar_prefetch = 0 : i64, scratch_operands = 3 : i64, tpu.core_type = #tpu.core_type<tc>, window_params = [{transform_indices = @transform_0, window_bounds = array<i64: 1, 8, 32>}, {pipeline_mode = #tpu.pipeline_mode<synchronous>, transform_indices = @transform_1, window_bounds = array<i64: 32, 32>}, {pipeline_mode = #tpu.pipeline_mode<synchronous>, transform_indices = @transform_2, window_bounds = array<i64: 1, 32>}, {pipeline_mode = #tpu.pipeline_mode<synchronous>, transform_indices = @transform_3, window_bounds = array<i64: 32, 32>}, {pipeline_mode = #tpu.pipeline_mode<synchronous>, transform_indices = @transform_4, window_bounds = array<i64: 1, 32>}, {pipeline_mode = #tpu.pipeline_mode<synchronous>, transform_indices = @transform_5, window_bounds = array<i64: 32, 32>}, {pipeline_mode = #tpu.pipeline_mode<synchronous>, transform_indices = @transform_6, window_bounds = array<i64: 1, 32>}, {pipeline_mode = #tpu.pipeline_mode<synchronous>, transform_indices = @transform_7, window_bounds = array<i64: 32, 32>}, {pipeline_mode = #tpu.pipeline_mode<synchronous>, transform_indices = @transform_8, window_bounds = array<i64: 1, 32>}, {transform_indices = @transform_9, window_bounds = array<i64: 1, 8, 32>}]} {
    %c0_i32 = arith.constant 0 : i32
    %0 = arith.cmpi eq, %arg1, %c0_i32 : i32
    %1 = arith.extui %0 : i1 to i32
    %c0_i32_0 = arith.constant 0 : i32
    %2 = arith.cmpi ne, %1, %c0_i32_0 : i32
    scf.if %2 {
      %c0_59 = arith.constant 0 : index
      %c0_60 = arith.constant 0 : index
      %c0_61 = arith.constant 0 : index
      %104 = vector.load %arg2[%c0_59, %c0_60, %c0_61] : memref<1x8x32xf32, #tpu.memory_space<vmem>>, vector<1x8x32xf32>
      %105 = vector.shape_cast %104 : vector<1x8x32xf32> to vector<8x32xf32>
      %c0_62 = arith.constant 0 : index
      %c0_63 = arith.constant 0 : index
      %106 = vector.load %arg5[%c0_62, %c0_63] : memref<32x32xf32, #tpu.memory_space<vmem>>, vector<32x32xf32>
      %cst_64 = arith.constant dense<0.000000e+00> : vector<8x32xf32>
      %107 = tpu.matmul %105, %106, %cst_64 {dimension_numbers = #tpu.dot_dimension_numbers<[1], [0], [0], [1], [0, 0, 1, 1], [], []>} : vector<8x32xf32>, vector<32x32xf32>, vector<8x32xf32> -> vector<8x32xf32>
      %c0_65 = arith.constant 0 : index
      %c0_66 = arith.constant 0 : index
      %108 = vector.load %arg6[%c0_65, %c0_66] : memref<1x32xf32, #tpu.memory_space<vmem>>, vector<1x32xf32>
      %109 = vector.broadcast %108 : vector<1x32xf32> to vector<8x32xf32>
      %110 = arith.addf %107, %109 : vector<8x32xf32>
      %c0_67 = arith.constant 0 : index
      %c0_68 = arith.constant 0 : index
      %111 = vector.load %arg7[%c0_67, %c0_68] : memref<32x32xf32, #tpu.memory_space<vmem>>, vector<32x32xf32>
      %cst_69 = arith.constant dense<0.000000e+00> : vector<8x32xf32>
      %112 = tpu.matmul %105, %111, %cst_69 {dimension_numbers = #tpu.dot_dimension_numbers<[1], [0], [0], [1], [0, 0, 1, 1], [], []>} : vector<8x32xf32>, vector<32x32xf32>, vector<8x32xf32> -> vector<8x32xf32>
      %c0_70 = arith.constant 0 : index
      %c0_71 = arith.constant 0 : index
      %113 = vector.load %arg8[%c0_70, %c0_71] : memref<1x32xf32, #tpu.memory_space<vmem>>, vector<1x32xf32>
      %114 = vector.broadcast %113 : vector<1x32xf32> to vector<8x32xf32>
      %115 = arith.addf %112, %114 : vector<8x32xf32>
      %116 = vector.extract_strided_slice %110 {offsets = [0, 0], sizes = [8, 8], strides = [1, 1]} : vector<8x32xf32> to vector<8x8xf32>
      %117 = arith.truncf %116 : vector<8x8xf32> to vector<8x8xbf16>
      %c0_72 = arith.constant 0 : index
      %c0_73 = arith.constant 0 : index
      %c0_74 = arith.constant 0 : index
      %118 = vector.load %arg12[%c0_72, %c0_73, %c0_74] : memref<4x8x8xbf16, #tpu.memory_space<vmem>>, vector<1x8x8xbf16>
      %119 = vector.shape_cast %118 : vector<1x8x8xbf16> to vector<8x8xbf16>
      %120 = vector.shape_cast %117 : vector<8x8xbf16> to vector<1x8x8xbf16>
      tpu.vector_store %arg12[%c0_72, %c0_73, %c0_74], %120 {strides = array<i32>} : memref<4x8x8xbf16, #tpu.memory_space<vmem>>, vector<1x8x8xbf16>,
      %121 = vector.extract_strided_slice %115 {offsets = [0, 0], sizes = [8, 8], strides = [1, 1]} : vector<8x32xf32> to vector<8x8xf32>
      %122 = arith.truncf %121 : vector<8x8xf32> to vector<8x8xbf16>
      %c0_75 = arith.constant 0 : index
      %c0_76 = arith.constant 0 : index
      %c0_77 = arith.constant 0 : index
      %123 = vector.load %arg13[%c0_75, %c0_76, %c0_77] : memref<4x8x8xbf16, #tpu.memory_space<vmem>>, vector<1x8x8xbf16>
      %124 = vector.shape_cast %123 : vector<1x8x8xbf16> to vector<8x8xbf16>
      %125 = vector.shape_cast %122 : vector<8x8xbf16> to vector<1x8x8xbf16>
      tpu.vector_store %arg13[%c0_75, %c0_76, %c0_77], %125 {strides = array<i32>} : memref<4x8x8xbf16, #tpu.memory_space<vmem>>, vector<1x8x8xbf16>,
      %126 = vector.extract_strided_slice %110 {offsets = [0, 8], sizes = [8, 8], strides = [1, 1]} : vector<8x32xf32> to vector<8x8xf32>
      %127 = arith.truncf %126 : vector<8x8xf32> to vector<8x8xbf16>
      %c1_78 = arith.constant 1 : index
      %c0_79 = arith.constant 0 : index
      %c0_80 = arith.constant 0 : index
      %128 = vector.load %arg12[%c1_78, %c0_79, %c0_80] : memref<4x8x8xbf16, #tpu.memory_space<vmem>>, vector<1x8x8xbf16>
      %129 = vector.shape_cast %128 : vector<1x8x8xbf16> to vector<8x8xbf16>
      %130 = vector.shape_cast %127 : vector<8x8xbf16> to vector<1x8x8xbf16>
      tpu.vector_store %arg12[%c1_78, %c0_79, %c0_80], %130 {strides = array<i32>} : memref<4x8x8xbf16, #tpu.memory_space<vmem>>, vector<1x8x8xbf16>,
      %131 = vector.extract_strided_slice %115 {offsets = [0, 8], sizes = [8, 8], strides = [1, 1]} : vector<8x32xf32> to vector<8x8xf32>
      %132 = arith.truncf %131 : vector<8x8xf32> to vector<8x8xbf16>
      %c1_81 = arith.constant 1 : index
      %c0_82 = arith.constant 0 : index
      %c0_83 = arith.constant 0 : index
      %133 = vector.load %arg13[%c1_81, %c0_82, %c0_83] : memref<4x8x8xbf16, #tpu.memory_space<vmem>>, vector<1x8x8xbf16>
      %134 = vector.shape_cast %133 : vector<1x8x8xbf16> to vector<8x8xbf16>
      %135 = vector.shape_cast %132 : vector<8x8xbf16> to vector<1x8x8xbf16>
      tpu.vector_store %arg13[%c1_81, %c0_82, %c0_83], %135 {strides = array<i32>} : memref<4x8x8xbf16, #tpu.memory_space<vmem>>, vector<1x8x8xbf16>,
      %136 = vector.extract_strided_slice %110 {offsets = [0, 16], sizes = [8, 8], strides = [1, 1]} : vector<8x32xf32> to vector<8x8xf32>
      %137 = arith.truncf %136 : vector<8x8xf32> to vector<8x8xbf16>
      %c2_84 = arith.constant 2 : index
      %c0_85 = arith.constant 0 : index
      %c0_86 = arith.constant 0 : index
      %138 = vector.load %arg12[%c2_84, %c0_85, %c0_86] : memref<4x8x8xbf16, #tpu.memory_space<vmem>>, vector<1x8x8xbf16>
      %139 = vector.shape_cast %138 : vector<1x8x8xbf16> to vector<8x8xbf16>
      %140 = vector.shape_cast %137 : vector<8x8xbf16> to vector<1x8x8xbf16>
      tpu.vector_store %arg12[%c2_84, %c0_85, %c0_86], %140 {strides = array<i32>} : memref<4x8x8xbf16, #tpu.memory_space<vmem>>, vector<1x8x8xbf16>,
      %141 = vector.extract_strided_slice %115 {offsets = [0, 16], sizes = [8, 8], strides = [1, 1]} : vector<8x32xf32> to vector<8x8xf32>
      %142 = arith.truncf %141 : vector<8x8xf32> to vector<8x8xbf16>
      %c2_87 = arith.constant 2 : index
      %c0_88 = arith.constant 0 : index
      %c0_89 = arith.constant 0 : index
      %143 = vector.load %arg13[%c2_87, %c0_88, %c0_89] : memref<4x8x8xbf16, #tpu.memory_space<vmem>>, vector<1x8x8xbf16>
      %144 = vector.shape_cast %143 : vector<1x8x8xbf16> to vector<8x8xbf16>
      %145 = vector.shape_cast %142 : vector<8x8xbf16> to vector<1x8x8xbf16>
      tpu.vector_store %arg13[%c2_87, %c0_88, %c0_89], %145 {strides = array<i32>} : memref<4x8x8xbf16, #tpu.memory_space<vmem>>, vector<1x8x8xbf16>,
      %146 = vector.extract_strided_slice %110 {offsets = [0, 24], sizes = [8, 8], strides = [1, 1]} : vector<8x32xf32> to vector<8x8xf32>
      %147 = arith.truncf %146 : vector<8x8xf32> to vector<8x8xbf16>
      %c3_90 = arith.constant 3 : index
      %c0_91 = arith.constant 0 : index
      %c0_92 = arith.constant 0 : index
      %148 = vector.load %arg12[%c3_90, %c0_91, %c0_92] : memref<4x8x8xbf16, #tpu.memory_space<vmem>>, vector<1x8x8xbf16>
      %149 = vector.shape_cast %148 : vector<1x8x8xbf16> to vector<8x8xbf16>
      %150 = vector.shape_cast %147 : vector<8x8xbf16> to vector<1x8x8xbf16>
      tpu.vector_store %arg12[%c3_90, %c0_91, %c0_92], %150 {strides = array<i32>} : memref<4x8x8xbf16, #tpu.memory_space<vmem>>, vector<1x8x8xbf16>,
      %151 = vector.extract_strided_slice %115 {offsets = [0, 24], sizes = [8, 8], strides = [1, 1]} : vector<8x32xf32> to vector<8x8xf32>
      %152 = arith.truncf %151 : vector<8x8xf32> to vector<8x8xbf16>
      %c3_93 = arith.constant 3 : index
      %c0_94 = arith.constant 0 : index
      %c0_95 = arith.constant 0 : index
      %153 = vector.load %arg13[%c3_93, %c0_94, %c0_95] : memref<4x8x8xbf16, #tpu.memory_space<vmem>>, vector<1x8x8xbf16>
      %154 = vector.shape_cast %153 : vector<1x8x8xbf16> to vector<8x8xbf16>
      %155 = vector.shape_cast %152 : vector<8x8xbf16> to vector<1x8x8xbf16>
      tpu.vector_store %arg13[%c3_93, %c0_94, %c0_95], %155 {strides = array<i32>} : memref<4x8x8xbf16, #tpu.memory_space<vmem>>, vector<1x8x8xbf16>,
    } else {
    }
    %c8_i32 = arith.constant 8 : i32
    %3 = arith.muli %arg1, %c8_i32 : i32
    %4 = tpu.assume_multiple %3, 8 : i32
    %c0 = arith.constant 0 : index
    %5 = arith.index_cast %4 : i32 to index
    %c0_1 = arith.constant 0 : index
    %6 = vector.load %arg2[%c0, %5, %c0_1] : memref<1x8x32xf32, #tpu.memory_space<vmem>>, vector<1x8x32xf32>
    %7 = vector.shape_cast %6 : vector<1x8x32xf32> to vector<8x32xf32>
    %c0_2 = arith.constant 0 : index
    %c0_3 = arith.constant 0 : index
    %8 = vector.load %arg3[%c0_2, %c0_3] : memref<32x32xf32, #tpu.memory_space<vmem>>, vector<32x32xf32>
    %cst = arith.constant dense<0.000000e+00> : vector<8x32xf32>
    %9 = tpu.matmul %7, %8, %cst {dimension_numbers = #tpu.dot_dimension_numbers<[1], [0], [0], [1], [0, 0, 1, 1], [], []>} : vector<8x32xf32>, vector<32x32xf32>, vector<8x32xf32> -> vector<8x32xf32>
    %c0_4 = arith.constant 0 : index
    %c0_5 = arith.constant 0 : index
    %10 = vector.load %arg4[%c0_4, %c0_5] : memref<1x32xf32, #tpu.memory_space<vmem>>, vector<1x32xf32>
    %11 = vector.broadcast %10 : vector<1x32xf32> to vector<8x32xf32>
    %12 = arith.addf %9, %11 : vector<8x32xf32>
    %cst_6 = arith.constant 0.353553385 : f32
    %13 = vector.broadcast %cst_6 : f32 to vector<8x32xf32>
    %14 = arith.mulf %12, %13 : vector<8x32xf32>
    %15 = vector.extract_strided_slice %14 {offsets = [0, 0], sizes = [8, 8], strides = [1, 1]} : vector<8x32xf32> to vector<8x8xf32>
    %16 = arith.truncf %15 : vector<8x8xf32> to vector<8x8xbf16>
    %c0_7 = arith.constant 0 : index
    %c0_8 = arith.constant 0 : index
    %c0_9 = arith.constant 0 : index
    %17 = vector.load %arg12[%c0_7, %c0_8, %c0_9] : memref<4x8x8xbf16, #tpu.memory_space<vmem>>, vector<1x8x8xbf16>
    %18 = vector.shape_cast %17 : vector<1x8x8xbf16> to vector<8x8xbf16>
    %c0_10 = arith.constant 0 : index
    %c0_11 = arith.constant 0 : index
    %c0_12 = arith.constant 0 : index
    %19 = vector.load %arg13[%c0_10, %c0_11, %c0_12] : memref<4x8x8xbf16, #tpu.memory_space<vmem>>, vector<1x8x8xbf16>
    %20 = vector.shape_cast %19 : vector<1x8x8xbf16> to vector<8x8xbf16>
    %cst_13 = arith.constant dense<0.000000e+00> : vector<8x8xf32>
    %21 = tpu.matmul %16, %18, %cst_13 {dimension_numbers = #tpu.dot_dimension_numbers<[1], [1], [0], [0], [0, 0, 1, 0], [], []>} : vector<8x8xbf16>, vector<8x8xbf16>, vector<8x8xf32> -> vector<8x8xf32>
    %cst_14 = arith.constant dense<0xFF800000> : vector<8xf32>
    %22 = vector.multi_reduction <maximumf>, %21, %cst_14 [1] : vector<8x8xf32> to vector<8xf32>
    %23 = vector.shape_cast %22 : vector<8xf32> to vector<8x1xf32>
    %24 = vector.broadcast %23 : vector<8x1xf32> to vector<8x8xf32>
    %25 = arith.subf %21, %24 : vector<8x8xf32>
    %26 = math.exp %25 : vector<8x8xf32>
    %cst_15 = arith.constant dense<0.000000e+00> : vector<8xf32>
    %27 = vector.multi_reduction <add>, %26, %cst_15 [1] : vector<8x8xf32> to vector<8xf32>
    %28 = vector.shape_cast %27 : vector<8xf32> to vector<8x1xf32>
    %29 = tpu.reciprocal %28 {approx = true} : vector<8x1xf32> -> vector<8x1xf32>
    %30 = vector.broadcast %29 : vector<8x1xf32> to vector<8x8xf32>
    %31 = arith.mulf %26, %30 : vector<8x8xf32>
    %32 = arith.truncf %31 : vector<8x8xf32> to vector<8x8xbf16>
    %cst_16 = arith.constant dense<0.000000e+00> : vector<8x8xf32>
    %33 = tpu.matmul %32, %20, %cst_16 {dimension_numbers = #tpu.dot_dimension_numbers<[1], [0], [0], [1], [0, 0, 1, 1], [], []>} : vector<8x8xbf16>, vector<8x8xbf16>, vector<8x8xf32> -> vector<8x8xf32>
    %c0_17 = arith.constant 0 : index
    %c0_18 = arith.constant 0 : index
    %34 = vector.load %arg14[%c0_17, %c0_18] : memref<8x32xf32, #tpu.memory_space<vmem>>, vector<8x8xf32>
    tpu.vector_store %arg14[%c0_17, %c0_18], %33 {strides = array<i32>} : memref<8x32xf32, #tpu.memory_space<vmem>>, vector<8x8xf32>,
    %35 = vector.extract_strided_slice %14 {offsets = [0, 8], sizes = [8, 8], strides = [1, 1]} : vector<8x32xf32> to vector<8x8xf32>
    %36 = arith.truncf %35 : vector<8x8xf32> to vector<8x8xbf16>
    %c1 = arith.constant 1 : index
    %c0_19 = arith.constant 0 : index
    %c0_20 = arith.constant 0 : index
    %37 = vector.load %arg12[%c1, %c0_19, %c0_20] : memref<4x8x8xbf16, #tpu.memory_space<vmem>>, vector<1x8x8xbf16>
    %38 = vector.shape_cast %37 : vector<1x8x8xbf16> to vector<8x8xbf16>
    %c1_21 = arith.constant 1 : index
    %c0_22 = arith.constant 0 : index
    %c0_23 = arith.constant 0 : index
    %39 = vector.load %arg13[%c1_21, %c0_22, %c0_23] : memref<4x8x8xbf16, #tpu.memory_space<vmem>>, vector<1x8x8xbf16>
    %40 = vector.shape_cast %39 : vector<1x8x8xbf16> to vector<8x8xbf16>
    %cst_24 = arith.constant dense<0.000000e+00> : vector<8x8xf32>
    %41 = tpu.matmul %36, %38, %cst_24 {dimension_numbers = #tpu.dot_dimension_numbers<[1], [1], [0], [0], [0, 0, 1, 0], [], []>} : vector<8x8xbf16>, vector<8x8xbf16>, vector<8x8xf32> -> vector<8x8xf32>
    %cst_25 = arith.constant dense<0xFF800000> : vector<8xf32>
    %42 = vector.multi_reduction <maximumf>, %41, %cst_25 [1] : vector<8x8xf32> to vector<8xf32>
    %43 = vector.shape_cast %42 : vector<8xf32> to vector<8x1xf32>
    %44 = vector.broadcast %43 : vector<8x1xf32> to vector<8x8xf32>
    %45 = arith.subf %41, %44 : vector<8x8xf32>
    %46 = math.exp %45 : vector<8x8xf32>
    %cst_26 = arith.constant dense<0.000000e+00> : vector<8xf32>
    %47 = vector.multi_reduction <add>, %46, %cst_26 [1] : vector<8x8xf32> to vector<8xf32>
    %48 = vector.shape_cast %47 : vector<8xf32> to vector<8x1xf32>
    %49 = tpu.reciprocal %48 {approx = true} : vector<8x1xf32> -> vector<8x1xf32>
    %50 = vector.broadcast %49 : vector<8x1xf32> to vector<8x8xf32>
    %51 = arith.mulf %46, %50 : vector<8x8xf32>
    %52 = arith.truncf %51 : vector<8x8xf32> to vector<8x8xbf16>
    %cst_27 = arith.constant dense<0.000000e+00> : vector<8x8xf32>
    %53 = tpu.matmul %52, %40, %cst_27 {dimension_numbers = #tpu.dot_dimension_numbers<[1], [0], [0], [1], [0, 0, 1, 1], [], []>} : vector<8x8xbf16>, vector<8x8xbf16>, vector<8x8xf32> -> vector<8x8xf32>
    %c0_28 = arith.constant 0 : index
    %c8 = arith.constant 8 : index
    %54 = vector.load %arg14[%c0_28, %c8] : memref<8x32xf32, #tpu.memory_space<vmem>>, vector<8x8xf32>
    tpu.vector_store %arg14[%c0_28, %c8], %53 {strides = array<i32>} : memref<8x32xf32, #tpu.memory_space<vmem>>, vector<8x8xf32>,
    %55 = vector.extract_strided_slice %14 {offsets = [0, 16], sizes = [8, 8], strides = [1, 1]} : vector<8x32xf32> to vector<8x8xf32>
    %56 = arith.truncf %55 : vector<8x8xf32> to vector<8x8xbf16>
    %c2 = arith.constant 2 : index
    %c0_29 = arith.constant 0 : index
    %c0_30 = arith.constant 0 : index
    %57 = vector.load %arg12[%c2, %c0_29, %c0_30] : memref<4x8x8xbf16, #tpu.memory_space<vmem>>, vector<1x8x8xbf16>
    %58 = vector.shape_cast %57 : vector<1x8x8xbf16> to vector<8x8xbf16>
    %c2_31 = arith.constant 2 : index
    %c0_32 = arith.constant 0 : index
    %c0_33 = arith.constant 0 : index
    %59 = vector.load %arg13[%c2_31, %c0_32, %c0_33] : memref<4x8x8xbf16, #tpu.memory_space<vmem>>, vector<1x8x8xbf16>
    %60 = vector.shape_cast %59 : vector<1x8x8xbf16> to vector<8x8xbf16>
    %cst_34 = arith.constant dense<0.000000e+00> : vector<8x8xf32>
    %61 = tpu.matmul %56, %58, %cst_34 {dimension_numbers = #tpu.dot_dimension_numbers<[1], [1], [0], [0], [0, 0, 1, 0], [], []>} : vector<8x8xbf16>, vector<8x8xbf16>, vector<8x8xf32> -> vector<8x8xf32>
    %cst_35 = arith.constant dense<0xFF800000> : vector<8xf32>
    %62 = vector.multi_reduction <maximumf>, %61, %cst_35 [1] : vector<8x8xf32> to vector<8xf32>
    %63 = vector.shape_cast %62 : vector<8xf32> to vector<8x1xf32>
    %64 = vector.broadcast %63 : vector<8x1xf32> to vector<8x8xf32>
    %65 = arith.subf %61, %64 : vector<8x8xf32>
    %66 = math.exp %65 : vector<8x8xf32>
    %cst_36 = arith.constant dense<0.000000e+00> : vector<8xf32>
    %67 = vector.multi_reduction <add>, %66, %cst_36 [1] : vector<8x8xf32> to vector<8xf32>
    %68 = vector.shape_cast %67 : vector<8xf32> to vector<8x1xf32>
    %69 = tpu.reciprocal %68 {approx = true} : vector<8x1xf32> -> vector<8x1xf32>
    %70 = vector.broadcast %69 : vector<8x1xf32> to vector<8x8xf32>
    %71 = arith.mulf %66, %70 : vector<8x8xf32>
    %72 = arith.truncf %71 : vector<8x8xf32> to vector<8x8xbf16>
    %cst_37 = arith.constant dense<0.000000e+00> : vector<8x8xf32>
    %73 = tpu.matmul %72, %60, %cst_37 {dimension_numbers = #tpu.dot_dimension_numbers<[1], [0], [0], [1], [0, 0, 1, 1], [], []>} : vector<8x8xbf16>, vector<8x8xbf16>, vector<8x8xf32> -> vector<8x8xf32>
    %c0_38 = arith.constant 0 : index
    %c16 = arith.constant 16 : index
    %74 = vector.load %arg14[%c0_38, %c16] : memref<8x32xf32, #tpu.memory_space<vmem>>, vector<8x8xf32>
    tpu.vector_store %arg14[%c0_38, %c16], %73 {strides = array<i32>} : memref<8x32xf32, #tpu.memory_space<vmem>>, vector<8x8xf32>,
    %75 = vector.extract_strided_slice %14 {offsets = [0, 24], sizes = [8, 8], strides = [1, 1]} : vector<8x32xf32> to vector<8x8xf32>
    %76 = arith.truncf %75 : vector<8x8xf32> to vector<8x8xbf16>
    %c3 = arith.constant 3 : index
    %c0_39 = arith.constant 0 : index
    %c0_40 = arith.constant 0 : index
    %77 = vector.load %arg12[%c3, %c0_39, %c0_40] : memref<4x8x8xbf16, #tpu.memory_space<vmem>>, vector<1x8x8xbf16>
    %78 = vector.shape_cast %77 : vector<1x8x8xbf16> to vector<8x8xbf16>
    %c3_41 = arith.constant 3 : index
    %c0_42 = arith.constant 0 : index
    %c0_43 = arith.constant 0 : index
    %79 = vector.load %arg13[%c3_41, %c0_42, %c0_43] : memref<4x8x8xbf16, #tpu.memory_space<vmem>>, vector<1x8x8xbf16>
    %80 = vector.shape_cast %79 : vector<1x8x8xbf16> to vector<8x8xbf16>
    %cst_44 = arith.constant dense<0.000000e+00> : vector<8x8xf32>
    %81 = tpu.matmul %76, %78, %cst_44 {dimension_numbers = #tpu.dot_dimension_numbers<[1], [1], [0], [0], [0, 0, 1, 0], [], []>} : vector<8x8xbf16>, vector<8x8xbf16>, vector<8x8xf32> -> vector<8x8xf32>
    %cst_45 = arith.constant dense<0xFF800000> : vector<8xf32>
    %82 = vector.multi_reduction <maximumf>, %81, %cst_45 [1] : vector<8x8xf32> to vector<8xf32>
    %83 = vector.shape_cast %82 : vector<8xf32> to vector<8x1xf32>
    %84 = vector.broadcast %83 : vector<8x1xf32> to vector<8x8xf32>
    %85 = arith.subf %81, %84 : vector<8x8xf32>
    %86 = math.exp %85 : vector<8x8xf32>
    %cst_46 = arith.constant dense<0.000000e+00> : vector<8xf32>
    %87 = vector.multi_reduction <add>, %86, %cst_46 [1] : vector<8x8xf32> to vector<8xf32>
    %88 = vector.shape_cast %87 : vector<8xf32> to vector<8x1xf32>
    %89 = tpu.reciprocal %88 {approx = true} : vector<8x1xf32> -> vector<8x1xf32>
    %90 = vector.broadcast %89 : vector<8x1xf32> to vector<8x8xf32>
    %91 = arith.mulf %86, %90 : vector<8x8xf32>
    %92 = arith.truncf %91 : vector<8x8xf32> to vector<8x8xbf16>
    %cst_47 = arith.constant dense<0.000000e+00> : vector<8x8xf32>
    %93 = tpu.matmul %92, %80, %cst_47 {dimension_numbers = #tpu.dot_dimension_numbers<[1], [0], [0], [1], [0, 0, 1, 1], [], []>} : vector<8x8xbf16>, vector<8x8xbf16>, vector<8x8xf32> -> vector<8x8xf32>
    %c0_48 = arith.constant 0 : index
    %c24 = arith.constant 24 : index
    %94 = vector.load %arg14[%c0_48, %c24] : memref<8x32xf32, #tpu.memory_space<vmem>>, vector<8x8xf32>
    tpu.vector_store %arg14[%c0_48, %c24], %93 {strides = array<i32>} : memref<8x32xf32, #tpu.memory_space<vmem>>, vector<8x8xf32>,
    %c0_49 = arith.constant 0 : index
    %c0_50 = arith.constant 0 : index
    %95 = vector.load %arg14[%c0_49, %c0_50] : memref<8x32xf32, #tpu.memory_space<vmem>>, vector<8x32xf32>
    %c0_51 = arith.constant 0 : index
    %c0_52 = arith.constant 0 : index
    %96 = vector.load %arg9[%c0_51, %c0_52] : memref<32x32xf32, #tpu.memory_space<vmem>>, vector<32x32xf32>
    %cst_53 = arith.constant dense<0.000000e+00> : vector<8x32xf32>
    %97 = tpu.matmul %95, %96, %cst_53 {dimension_numbers = #tpu.dot_dimension_numbers<[1], [0], [0], [1], [0, 0, 1, 1], [], []>} : vector<8x32xf32>, vector<32x32xf32>, vector<8x32xf32> -> vector<8x32xf32>
    %c0_54 = arith.constant 0 : index
    %c0_55 = arith.constant 0 : index
    %98 = vector.load %arg10[%c0_54, %c0_55] : memref<1x32xf32, #tpu.memory_space<vmem>>, vector<1x32xf32>
    %99 = vector.broadcast %98 : vector<1x32xf32> to vector<8x32xf32>
    %100 = arith.addf %97, %99 : vector<8x32xf32>
    %c0_56 = arith.constant 0 : index
    %c0_57 = arith.constant 0 : index
    %c0_58 = arith.constant 0 : index
    %101 = vector.load %arg11[%c0_56, %c0_57, %c0_58] : memref<1x8x32xf32, #tpu.memory_space<vmem>>, vector<1x8x32xf32>
    %102 = vector.shape_cast %101 : vector<1x8x32xf32> to vector<8x32xf32>
    %103 = vector.shape_cast %100 : vector<8x32xf32> to vector<1x8x32xf32>
    tpu.vector_store %arg11[%c0_56, %c0_57, %c0_58], %103 {strides = array<i32>} : memref<1x8x32xf32, #tpu.memory_space<vmem>>, vector<1x8x32xf32>,
    return
  }
  func.func @transform_0(%arg0: i32, %arg1: i32) -> (i32, i32, i32) {
    %c0_i32 = arith.constant 0 : i32
    %c0_i32_0 = arith.constant 0 : i32
    %c0_i32_1 = arith.constant 0 : i32
    return %arg0, %c0_i32, %c0_i32_0 : i32, i32, i32
  }
  func.func @transform_1(%arg0: i32, %arg1: i32) -> (i32, i32) {
    %c0_i32 = arith.constant 0 : i32
    %c0_i32_0 = arith.constant 0 : i32
    %c0_i32_1 = arith.constant 0 : i32
    return %c0_i32, %c0_i32_0 : i32, i32
  }
  func.func @transform_2(%arg0: i32, %arg1: i32) -> (i32, i32) {
    %c0_i32 = arith.constant 0 : i32
    %c0_i32_0 = arith.constant 0 : i32
    %c0_i32_1 = arith.constant 0 : i32
    return %c0_i32, %c0_i32_0 : i32, i32
  }
  func.func @transform_3(%arg0: i32, %arg1: i32) -> (i32, i32) {
    %c0_i32 = arith.constant 0 : i32
    %c0_i32_0 = arith.constant 0 : i32
    %c0_i32_1 = arith.constant 0 : i32
    return %c0_i32, %c0_i32_0 : i32, i32
  }
  func.func @transform_4(%arg0: i32, %arg1: i32) -> (i32, i32) {
    %c0_i32 = arith.constant 0 : i32
    %c0_i32_0 = arith.constant 0 : i32
    %c0_i32_1 = arith.constant 0 : i32
    return %c0_i32, %c0_i32_0 : i32, i32
  }
  func.func @transform_5(%arg0: i32, %arg1: i32) -> (i32, i32) {
    %c0_i32 = arith.constant 0 : i32
    %c0_i32_0 = arith.constant 0 : i32
    %c0_i32_1 = arith.constant 0 : i32
    return %c0_i32, %c0_i32_0 : i32, i32
  }
  func.func @transform_6(%arg0: i32, %arg1: i32) -> (i32, i32) {
    %c0_i32 = arith.constant 0 : i32
    %c0_i32_0 = arith.constant 0 : i32
    %c0_i32_1 = arith.constant 0 : i32
    return %c0_i32, %c0_i32_0 : i32, i32
  }
  func.func @transform_7(%arg0: i32, %arg1: i32) -> (i32, i32) {
    %c0_i32 = arith.constant 0 : i32
    %c0_i32_0 = arith.constant 0 : i32
    %c0_i32_1 = arith.constant 0 : i32
    return %c0_i32, %c0_i32_0 : i32, i32
  }
  func.func @transform_8(%arg0: i32, %arg1: i32) -> (i32, i32) {
    %c0_i32 = arith.constant 0 : i32
    %c0_i32_0 = arith.constant 0 : i32
    %c0_i32_1 = arith.constant 0 : i32
    return %c0_i32, %c0_i32_0 : i32, i32
  }
  func.func @transform_9(%arg0: i32, %arg1: i32) -> (i32, i32, i32) {
    %c0_i32 = arith.constant 0 : i32
    %c0_i32_0 = arith.constant 0 : i32
    return %arg0, %arg1, %c0_i32 : i32, i32, i32
  }
}

</mosaic_0001>

<bundles_post_ra>
// kernel: tpu_custom_call.1
= control target key start
LH: loop header
LB: loop body
LE: loop exit
PB: predicated region body
PF: predicated region fallthrough
CT: control target
= control target key end

     0   :  { %s2318_s0 = inlined_call_operand.hbm [shape: f32[2,8,32], index: 0, kind: input, shape index: {}]   ;;  %s2319_s1 = inlined_call_operand.hbm [shape: f32[32,32], index: 1, kind: input, shape index: {}]   ;;  %s2320_s2 = inlined_call_operand.vmem [shape: f32[1,32], index: 2, kind: input, shape index: {}]   ;;  %s2321_s3 = inlined_call_operand.hbm [shape: f32[32,32], index: 3, kind: input, shape index: {}]   ;;  %s2322_s4 = inlined_call_operand.vmem [shape: f32[1,32], index: 4, kind: input, shape index: {}]   ;;  %s2323_s5 = inlined_call_operand.hbm [shape: f32[32,32], index: 5, kind: input, shape index: {}]   ;;  %s2324_s6 = inlined_call_operand.vmem [shape: f32[1,32], index: 6, kind: input, shape index: {}]   ;;  %s2325_s7 = inlined_call_operand.hbm [shape: f32[32,32], index: 7, kind: input, shape index: {}]   ;;  %s2326_s8 = inlined_call_operand.vmem [shape: f32[1,32], index: 8, kind: input, shape index: {}]   ;;  %s2327_s9 = inlined_call_operand.hbm [shape: f32[2,8,32], index: 9, kind: output, shape index: {}]  }
   0x1   :  { %2330 = sst [smem:[#allocation21_spill]] %s2319_s1 }
   0x2   :  { %2331 = sst [smem:[#allocation22_spill]] %s2321_s3 }
   0x3   :  { %2332 = sst [smem:[#allocation23_spill]] %s2323_s5 }
   0x4   :  { %2333 = sst [smem:[#allocation24_spill]] %s2325_s7 }
   0x5   :  { %14 = vsyncpa [#allocation6], 0 }
   0x6   :  { %16 = vsyncpa [#allocation6 + $0x1], 0 }
   0x7   :  { %17 = vsyncpa [#allocation9], 0 }
   0x8   :  { %18 = vsyncpa [#allocation12], 0 }
   0x9   :  { %19 = vsyncpa [#allocation7], 0 }
   0xa   :  { %21 = vsyncpa [#allocation7 + $0x1], 0  ;;  %s1987_s30 = smov 0   ;;  %s1989_s10 = smov 0  }
   0xb   :  { %s1991_s11 = smov 0   ;;  %s1993_s12 = smov 0  }
   0xc   :  { %s1995_s13 = smov 0   ;;  %s1997_s14 = smov 0  }
   0xd LB: > { %2334 = sst [smem:[#allocation19_spill]] %s1915_s13  ;;  %s1401_s15 = sadd.s32 4294967295, %s1919_s14   ;;  %s1919_s14 = sphi %s1997_s14, %s27_s14   ;;  %s1915_s13 = sphi %s1995_s13, %s2351_s13   ;;  %s1911_s12 = sphi %s1993_s12, %s2350_s12   ;;  %s1907_s11 = sphi %s1991_s11, %s2354_s11   ;;  %s1903_s10 = sphi %s1989_s10, %s2353_s10   ;;  %s1899_s30 = sphi %s1987_s30, %s2352_s30  }
   0xe   : > { %p1403_p0 = scmp.ge.s32.totalorder %s1919_s14, 1  ;;  %p2021_p1 = scmp.eq.s32.totalorder %s1401_s15, 0 }
   0xf   : > { %p266_p2 = scmp.lt.s32.totalorder %s1919_s14, 3  ;;  %s1921_s18 = smov [#allocation8]  }
  0x10   : > { %s278_s19 = sshll.u32 %s1921_s18, 4  ;;  %s1922_s21 = smov [#allocation11]   ;;  %s279_s19 = int_to_ptr.vmem [resolvable:$true] %s278_s19 }
  0x11   : > { %p2026_p3 = pnand %p1403_p0, %p266_p2  ;;  %s310_s22 = sshll.u32 %s1922_s21, 4  ;;  %s311_s22 = int_to_ptr.vmem [resolvable:$true] %s310_s22 }
  0x12   : > { %s1923_s23 = smov [#allocation10]   ;;  %s1710_s25 = scalar_lea.vmem %s279_s19, 512 }
  0x13   : > { %p1590_p4 = pneg %p2026_p3  ;;  %s294_s24 = sshll.u32 %s1923_s23, 4  ;;  %s295_s24 = int_to_ptr.vmem [resolvable:$true] %s294_s24 }
  0x14   : > { %p1711_p8 = scmp.ne.s32.totalorder %s279_s19, %s1710_s25  ;;  %p1718_p11 = scmp.lt.s32.totalorder %s279_s19, %s279_s19 }
  0x15   : > { %p2035_p6 = pnand %p1590_p4, %p2021_p1  ;;  %p1719_p12 = scmp.lt.s32.totalorder %s1710_s25, %s1710_s25 }
  0x17   : > { %p1701_p7 = pneg %p2035_p6  ;;  %p1720_p13 = por %p1719_p12, %p1718_p11 }
  0x19   : > { %p1713_p9 = pnand %p1711_p8, %p1701_p7 }
  0x1b   : > { %p1714_p10 = pneg %p1713_p9 }
  0x1d   : > { %p1721_p0 = pnand %p1720_p13, %p1714_p10 }
  0x1f   : > { %1724 = shalt.err (!%p1721_p0)
}
  0x20   : > { %s1924_s26 = smov 128   ;;  %s1925_s27 = smov 8  }
  0x21   : > { %s2338_s1 = sld [smem:[#allocation21_spill]]  ;;  %s1736_s18 = scalar_lea.vmem %s311_s22, 512 }
  0x22   : > { %p1737_p2 = scmp.ne.s32.totalorder %s311_s22, %s1736_s18  ;;  %p1744_p9 = scmp.lt.s32.totalorder %s311_s22, %s311_s22 }
  0x23   : > { %p1745_p10 = scmp.lt.s32.totalorder %s1736_s18, %s1736_s18 }
  0x24   : > { %p1739_p4 = pnand %p1737_p2, %p1701_p7 }
  0x25   : > { %p1746_p11 = por %p1745_p10, %p1744_p9 }
  0x26   : > { %p1740_p8 = pneg %p1739_p4 }
  0x27   : > { %1593 = dma.hbm_to_vmem [thread:$0]  (!%p2035_p6), %s2338_s1, 512, %s279_s19, [#allocation9], %s1924_s26, %s1924_s26, %s1925_s27  }
  0x28   : > { %p1747_p12 = pnand %p1746_p11, %p1740_p8 }
  0x2a   : > { %1750 = shalt.err (!%p1747_p12)
}
  0x2b   : > { %s2339_s5 = sld [smem:[#allocation23_spill]]  ;;  %s1762_s19 = scalar_lea.vmem %s295_s24, 512 }
  0x2c   : > { %p1763_p13 = scmp.ne.s32.totalorder %s295_s24, %s1762_s19  ;;  %p1770_p4 = scmp.lt.s32.totalorder %s295_s24, %s295_s24 }
  0x2d   : > { %p1771_p8 = scmp.lt.s32.totalorder %s1762_s19, %s1762_s19 }
  0x2e   : > { %p1765_p0 = pnand %p1763_p13, %p1701_p7 }
  0x2f   : > { %p1772_p9 = por %p1771_p8, %p1770_p4 }
  0x30   : > { %p1766_p2 = pneg %p1765_p0 }
  0x31   : > { %1599 = dma.hbm_to_vmem [thread:$0]  (!%p2035_p6), %s2339_s5, 512, %s311_s22, [#allocation12], %s1924_s26, %s1924_s26, %s1925_s27  }
  0x32   : > { %p1773_p10 = pnand %p1772_p9, %p1766_p2 }
  0x34   : > { %1776 = shalt.err (!%p1773_p10)
}
  0x35   : > { %s2340_s3 = sld [smem:[#allocation22_spill]]  ;;  %s1926_s22 = smov [#allocation13]  }
  0x36   : > { %s326_s29 = sshll.u32 %s1926_s22, 4  ;;  %s327_s29 = int_to_ptr.vmem [resolvable:$true] %s326_s29 }
  0x37   : > { %s1788_s18 = scalar_lea.vmem %s327_s29, 512  ;;  %p1796_p0 = scmp.lt.s32.totalorder %s327_s29, %s327_s29 }
  0x38   : > { %p1789_p11 = scmp.ne.s32.totalorder %s327_s29, %s1788_s18  ;;  %p1797_p2 = scmp.lt.s32.totalorder %s1788_s18, %s1788_s18 }
  0x3a   : > { %p1791_p12 = pnand %p1789_p11, %p1701_p7  ;;  %p1798_p4 = por %p1797_p2, %p1796_p0 }
  0x3b   : > { %1596 = dma.hbm_to_vmem [thread:$0]  (!%p2035_p6), %s2340_s3, 512, %s295_s24, [#allocation9], %s1924_s26, %s1924_s26, %s1925_s27  }
  0x3c   : > { %p1792_p13 = pneg %p1791_p12 }
  0x3e   : > { %p1799_p8 = pnand %p1798_p4, %p1792_p13 }
  0x40   : > { %1802 = shalt.err (!%p1799_p8)
}
  0x41   : > { %s2341_s7 = sld [smem:[#allocation24_spill]]  ;;  %s1402_s20 = sadd.s32 4294967294, %s1919_s14  }
  0x42   : > { %s39_s23 = sadd.s32 1, %s1915_s13  ;;  %s46_s19 = sadd.s32 1, %s1907_s11 }
  0x43   : > { %p41_p7 = scmp.ge.s32.totalorder %s39_s23, 2  ;;  %p53_p9 = scmp.ne.s32.totalorder %s1907_s11, %s1903_s10 }
  0x44   : > { %p54_p10 = scmp.eq.s32.totalorder %s1919_s14, 0  ;;  %p59_p12 = scmp.ne.s32.totalorder %s1903_s10, %s1899_s30 }
  0x45   : > { %s2356_s23 = smov (%p41_p7, %s39_s23), 0  ;;  %p259_p4 = scmp.eq.s32.totalorder %s1402_s20, 1 }
  0x46   : > { %2342 = sst [smem:[#allocation20_spill]] %s2356_s23  ;;  %p2093_p11 = por %p54_p10, %p53_p9 }
  0x47   : > { %1602 = dma.hbm_to_vmem [thread:$0]  (!%p2035_p6), %s2341_s7, 512, %s327_s29, [#allocation12], %s1924_s26, %s1924_s26, %s1925_s27  }
  0x48   : > { %s43_s26 = ssub.s32 %s1915_s13, %s2356_s23  ;;  %p253_p6 = scmp.eq.s32.totalorder %s1401_s15, 1 }
  0x49   : > { %p44_p13 = scmp.eq.s32.totalorder %s43_s26, 0  ;;  %p2105_p0 = por %p2021_p1, %p59_p12 }
  0x4a   : > { %p2109_p2 = por %p253_p6, %p53_p9  ;;  %p2116_p8 = por %p259_p4, %p59_p12 }
  0x4b   : > { %s2114_s22 = scalar_select %p44_p13, %s1907_s11, %s46_s19  }
  0x4c   : > { %s2346_s29 = scalar_select %p2116_p8, 1, 0 }
  0x4d   : > { %p1615_p7 = scmp.lt.s32.totalorder %s1919_s14, 2  ;;  %s343_s18 = sand.u32 1, %s1907_s11  }
  0x4e   : > { %s1410_s15 = sshll.u32 %s1915_s13, 7  ;;  %s1409_s24 = sshll.u32 %s343_s18, 3 }
  0x4f   : > { %s352_s1 = scalar_lea.hbm %s2318_s0, %s1410_s15  ;;  %s347_s3 = scalar_lea.vmem [#allocation5], %s1409_s24 }
  0x50   : > { %s354_s5 = sshll.u32 %s347_s3, 4  ;;  %p2128_p9 = pnand %p1615_p7, %p2093_p11  ;;  %s355_s5 = int_to_ptr.vmem [resolvable:$true] %s354_s5 }
  0x51   : > { %s344_s20 = scalar_lea.sflag [#allocation6], %s343_s18  ;;  %s1816_s19 = scalar_lea.vmem %s355_s5, 128 }
  0x52   : > { %p1805_p10 = pneg %p2128_p9  ;;  %p1817_p12 = scmp.ne.s32.totalorder %s355_s5, %s1816_s19 }
  0x53   : > { %s1927_s23 = smov [#allocation5]  }
  0x54   : > { %p1819_p6 = pnand %p1817_p12, %p1805_p10  ;;  %s1821_s13 = sshll.u32 %s1927_s23, 4  ;;  %s1822_s13 = int_to_ptr.vmem [resolvable:$false] %s1821_s13 }
  0x55   : > { %s1823_s15 = scalar_lea.vmem %s1822_s13, 256  ;;  %p1824_p4 = scmp.lt.s32.totalorder %s355_s5, %s1822_s13 }
  0x56   : > { %p1820_p13 = pneg %p1819_p6  ;;  %p1825_p5 = scmp.lt.s32.totalorder %s1823_s15, %s1816_s19 }
  0x58   : > { %p1826_p8 = por %p1825_p5, %p1824_p4 }
  0x5a   : > { %p1827_p11 = pnand %p1826_p8, %p1820_p13 }
  0x5c   : > { %1830 = shalt.err (!%p1827_p11)
}
  0x5d   : > { %1606 = dma.hbm_to_vmem [thread:$0]  (!%p2128_p9), %s352_s1, 128, %s355_s5, %s344_s20  }
  0x5e   : > { %363 = sbr.rel (%p2026_p3) target bundleno = 1495 (0x5d7), region = 56  ;;  %s2139_s3 = sand.u32 (!%p2026_p3), 1, %s1903_s10  }
  0x5f   : > { %s1412_s23 = sshll.u32 (!%p2026_p3), %s2139_s3, 3  ;;  %s366_s25 = scalar_lea.sflag (!%p2026_p3), [#allocation6], %s2139_s3 }
  0x60   : > { %s369_s13 = scalar_lea.vmem (!%p2026_p3), [#allocation5], %s1412_s23 }
  0x63   : > { %1882 = dma.done.wait (%p2105_p0), %s366_s25, 128  }
  0x64   : > { %1884 = vsyncadd (%p2105_p0), %s366_s25, 4294967168 }
  0x65   : > { %1886 = dma.done.wait (%p2021_p1), [#allocation9], 1024  }
  0x66   : > { %1888 = vsyncadd (%p2021_p1), [#allocation9], 4294966272 }
  0x67   : > { %1890 = dma.done.wait (%p2021_p1), [#allocation12], 1024  }
  0x68   : > { %1892 = vsyncadd (%p2021_p1), [#allocation12], 4294966272  ;;  %v1928_v0 = vmov 0.0   ;;  %vm1929_vm0 = vmmov 0   ;;  %v429_v1 = vld [vmem:[#allocation10 + $0x18] sm:$0xff]  ;;  %v428_v2 = vld [vmem:[#allocation10 + $0x10] sm:$0xff] }
  0x69   : > { %1478 = vmatprep.subr.mxu0 %v1928_v0  ;;  %1486 = vmatprep.mubr.msk.f32.mxu0 %vm1929_vm0, %v1928_v0  ;;  %v427_v3 = vld [vmem:[#allocation10 + $0x8] sm:$0xff]  ;;  %v426_v4 = vld [vmem:[#allocation10] sm:$0xff]  ;;  %v425_v5 = vld [vmem:[%s369_s13] sm:$0xff]  ;;  %vm437_vm1 = vcmask 261120   ;;  %vm593_vm2 = vcmask 60416   ;;  %s1930_s7 = smov 104  }
  0x6a   : > { %1489 = vmatprep.subr.mxu1 %v1928_v0  ;;  %1497 = vmatprep.mubr.msk.f32.mxu1 %vm1929_vm0, %v1928_v0  ;;  %v639_v6 = vld [vmem:[#allocation8 + $0x18] sm:$0xff]  ;;  %v638_v7 = vld [vmem:[#allocation8 + $0x10] sm:$0xff]  ;;  %v637_v8 = vld [vmem:[#allocation8 + $0x8] sm:$0xff]  ;;  %s1931_s16 = smov 120   ;;  %s1932_s18 = smov 112   ;;  %vm725_vm3 = vcmask 64512  }
  0x6b   : > { %1479 = vmatpush3.msra.mxu0 %v429_v1  ;;  %v636_v9 = vld [vmem:[#allocation8] sm:$0xff]  ;;  %v514_v10 = vld [vmem:[#allocation11 + $0x18] sm:$0xff]  ;;  %v513_v11 = vld [vmem:[#allocation11 + $0x10] sm:$0xff]  ;;  %vm787_vm4 = vcmask 1043456   ;;  %s1933_s26 = smov 8   ;;  %s1934_s20 = smov 16  }
  0x6c   : > { %1480 = vmatprep.subr.mxu0 %v1928_v0  ;;  %1490 = vmatpush3.msra.mxu1 %v514_v10  ;;  %v512_v12 = vld [vmem:[#allocation11 + $0x8] sm:$0xff]  ;;  %v511_v13 = vld [vmem:[#allocation11] sm:$0xff]  ;;  %s1935_s19 = smov 24   ;;  %vm947_vm5 = vcmask 130112   ;;  %vm1063_vm6 = vcmask 195712   ;;  %vm1179_vm7 = vcmask 261312  }
  0x6d   : > { %1481 = vmatpush3.msra.mxu0 %v428_v2  ;;  %1491 = vmatprep.subr.mxu1 %v1928_v0  ;;  %v1418_v14 = vld [vmem:[%s2322_s4] ss:$0 sm:$0xff]  ;;  %s1437_s13 = sshll.u32 %s1911_s12, 7  ;;  %s419_s1 = scalar_lea.vmem [#allocation14], %s1412_s23 }
  0x6e   : > { %1482 = vmatprep.subr.mxu0 %v1928_v0  ;;  %1492 = vmatpush3.msra.mxu1 %v513_v11  ;;  %v1424_v19 = vld [vmem:[%s2320_s2] ss:$0 sm:$0xff]  ;;  %s1282_s5 = sshll.u32 %s419_s1, 4  ;;  %s2275_s17 = scalar_lea.hbm %s2327_s9, %s1437_s13  ;;  %s1283_s5 = int_to_ptr.vmem [resolvable:$true] %s1282_s5 }
  0x6f   : > { %1483 = vmatpush3.msra.mxu0 %v427_v3  ;;  %1493 = vmatprep.subr.mxu1 %v1928_v0  ;;  %v1420_v27 = vld [vmem:[%s2324_s6] ss:$0 sm:$0xff]  ;;  %s1268_s27 = scalar_lea.sflag [#allocation7], %s2139_s3  ;;  %s1936_s12 = smov [#allocation14]  }
  0x70   : > { %1484 = vmatprep.subr.mxu0 %v1928_v0  ;;  %1494 = vmatpush3.msra.mxu1 %v512_v12  ;;  %s1835_s23 = sshll.u32 %s1936_s12, 4  ;;  %s1836_s23 = int_to_ptr.vmem [resolvable:$false] %s1835_s23 }
  0x71   : > { %1485 = vmatpush3.msra.mxu0 %v426_v4  ;;  %1495 = vmatprep.subr.mxu1 %v1928_v0  ;;  %s1837_s24 = scalar_lea.vmem %s1836_s23, 256  ;;  %p1838_p0 = scmp.lt.s32.totalorder %s1283_s5, %s1836_s23 }
  0x72   : > { %1487 = vmatmul.mubr.msk.f32.vlgmr.msra.gmra.mxu0 %vm437_vm1, %v425_v5  ;;  %1500 = vmatprep.subr.mxu0 %v1928_v0 }
  0x73   : > { %1501 = vmatpush3.msra.mxu0 %v639_v6  ;;  %1508 = vmatprep.mubr.msk.f32.mxu0 %vm1929_vm0, %v1928_v0 }
  0x74   : > { %1502 = vmatprep.subr.mxu0 %v1928_v0  ;;  %1496 = vmatpush3.msra.mxu1 %v511_v13 }
  0x75   : > { %1503 = vmatpush3.msra.mxu0 %v638_v7  ;;  %1511 = vmatprep.subr.bf16.mxu1 %v1928_v0 }
  0x76   : > { %1504 = vmatprep.subr.mxu0 %v1928_v0  ;;  %1498 = vmatmul.mubr.msk.f32.vlgmr.msra.gmra.mxu1 %vm437_vm1, %v425_v5 }
  0x77   : > { %1505 = vmatpush3.msra.mxu0 %v637_v8  ;;  %1513 = vmatprep.mubr.msk.bf16.mxu1 %vm1929_vm0, %v1928_v0 }
  0x78   : > { %1506 = vmatprep.subr.mxu0 %v1928_v0 }
  0x79   : > { %1507 = vmatpush3.msra.mxu0 %v636_v9 }
  0x7a   : > { %1509 = vmatmul.mubr.msk.f32.vlgmr.msra.gmra.mxu0 %vm437_vm1, %v425_v5  ;;  %1517 = vmatprep.subr.bf16.mxu0 %v1928_v0 }
  0x7b   : > { %1519 = vmatprep.mubr.msk.bf16.mxu0 %vm1929_vm0, %v1928_v0 }
 0x132   : > { %v507_v15 = vpop.f32.mrf.mxu0 }
 0x133   : > { %v508_v16 = vadd.f32 %v1418_v14, %v507_v15 }
 0x134   : > { %v1488_v17 = vpop.f32.mrf.mxu0 }
 0x135   : > { %v592_v18 = vpack.c.bf16 %v508_v16, %v508_v16 }
 0x136   : > { %v588_v28 = vpop.f32.mrf.mxu1 }
 0x137   : > { %594 = vst.msk [vmem:[#allocation2] sm:$0xf] %vm593_vm2, %v592_v18  ;;  %623 = vrot.lane.b32.xlu1 %v592_v18, %s1930_s7  ;;  %600 = vrot.lane.b32.xlu0 %v592_v18, %s1931_s16  ;;  %v589_v29 = vadd.f32 %v1420_v27, %v588_v28 }
 0x138   : > { %v1499_v30 = vpop.f32.mrf.mxu1 }
 0x139   : > { %v2205_v31 = vpack.c.bf16 %v589_v29, %v589_v29 }
 0x13a   : > { %v717_v20 = vpop.f32.mrf.mxu0 }
 0x13b   : > { %613 = vrot.lane.b32.xlu0 %v592_v18, %s1932_s18  ;;  %v718_v21 = vadd.f32 %v1424_v19, %v717_v20  ;;  %596 = vst.msk [vmem:[#allocation3] sm:$0xf] %vm593_vm2, %v2205_v31 }
 0x13c   : > { %v1510_v22 = vpop.f32.mrf.mxu0 }
 0x13d   : > { %v721_v23 = vmul.f32 0.35355338, %v718_v21 }
 0x13e   : > { %v723_v24 = vld [vmem:[#allocation2] sm:$0xf] }
 0x13f   : > { %v722_v25 = vpack.c.bf16 %v721_v23, %v721_v23  ;;  %v730_v26 = vsel %vm725_vm3, %v723_v24, 0 }
 0x140   : > { %1512 = vmatpush3.bf16.xpose.msra.mxu1 %v730_v26 }
 0x141   : > { %837 = vrot.lane.b32.xlu1 %v722_v25, %s1931_s16  ;;  %953 = vrot.lane.b32.xlu0 %v722_v25, %s1932_s18 }
 0x142   : > { %1523 = vmatprep.subr.bf16.mxu1 %v1928_v0  ;;  %v724_v32 = vld [vmem:[#allocation3] sm:$0xf] }
 0x143   : > { %v789_v33 = vsel %vm787_vm4, %v724_v32, 0 }
 0x144   : > { %1518 = vmatpush3.bf16.msra.mxu0 %v789_v33 }
 0x145   : > { %1069 = vrot.lane.b32.xlu1 %v722_v25, %s1930_s7  ;;  %1529 = vmatprep.subr.bf16.mxu0 %v1928_v0 }
 0x147   : > { %1514 = vmatmul.mubr.msk.bf16.vlgmr.msra.gmra.mxu1 %vm725_vm3, %v722_v25 }
 0x148   : > { %1525 = vmatprep.mubr.msk.bf16.mxu1 %vm1929_vm0, %v1928_v0 }
 0x1a9   : > { %v624_v34 = vpop.permute.xlu1 %623  ;;  %v601_v35 = vpop.permute.xlu0 %600 }
 0x1aa   : > { %627 = vst.msk [vmem:[#allocation2 + $0xc] sm:$0xf] %vm593_vm2, %v624_v34  ;;  %604 = vst.msk [vmem:[#allocation2 + $0x4] sm:$0xf] %vm593_vm2, %v601_v35 }
 0x1ad   : > { %v614_v36 = vpop.permute.xlu0 %613 }
 0x1ae   : > { %617 = vst.msk [vmem:[#allocation2 + $0x8] sm:$0xf] %vm593_vm2, %v614_v36 }
 0x1b1   : > { %v833_v37 = vld [vmem:[#allocation2 + $0x4] sm:$0xf]  ;;  %v1066_v42 = vld [vmem:[#allocation2 + $0xc] sm:$0xf] }
 0x1b2   : > { %v843_v38 = vsel %vm725_vm3, %v833_v37, 0  ;;  %v1075_v44 = vsel %vm725_vm3, %v1066_v42, 0 }
 0x1b3   : > { %1524 = vmatpush3.bf16.xpose.msra.mxu1 %v843_v38  ;;  %v838_v40 = vpop.permute.xlu1 %837  ;;  %v954_v43 = vpop.permute.xlu0 %953 }
 0x1b4   : > { %1535 = vmatprep.subr.bf16.mxu1 %v1928_v0 }
 0x1b5   : > { %v950_v39 = vld [vmem:[#allocation2 + $0x8] sm:$0xf] }
 0x1b6   : > { %v959_v41 = vsel %vm725_vm3, %v950_v39, 0 }
 0x1b7   : > { %v1070_v45 = vpop.permute.xlu1 %1069 }
 0x1ba   : > { %1526 = vmatmul.mubr.msk.bf16.vlgmr.msra.gmra.mxu1 %vm725_vm3, %v838_v40 }
 0x1bb   : > { %1536 = vmatpush3.bf16.xpose.msra.mxu1 %v959_v41  ;;  %1537 = vmatprep.mubr.msk.bf16.mxu1 %vm1929_vm0, %v1928_v0 }
 0x1bc   : > { %1547 = vmatprep.subr.bf16.mxu1 %v1928_v0 }
 0x1c2   : > { %1538 = vmatmul.mubr.msk.bf16.vlgmr.msra.gmra.mxu1 %vm725_vm3, %v954_v43 }
 0x1c3   : > { %1548 = vmatpush3.bf16.xpose.msra.mxu1 %v1075_v44  ;;  %1549 = vmatprep.mubr.msk.bf16.mxu1 %vm1929_vm0, %v1928_v0 }
 0x1c4   : > { %1559 = vmatprep.subr.mxu1 %v1928_v0 }
 0x1ca   : > { %1550 = vmatmul.mubr.msk.bf16.vlgmr.msra.gmra.mxu1 %vm725_vm3, %v1070_v45 }
 0x1cb   : > { %1567 = vmatprep.mubr.msk.f32.mxu1 %vm1929_vm0, %v1928_v0 }
 0x207   : > { %v766_v46 = vpop.f32.mrf.mxu1 }
 0x208   : > { %v772_v47 = vsel %vm725_vm3, %v766_v46, -inf }
 0x209   : > { %773 = vmax.xlane.f32.xlu0 %v772_v47  ;;  %v1515_v48 = vpop.f32.mrf.mxu1 }
 0x20b   : > { %v769_v49 = vpop.f32.mrf.mxu1 }
 0x20d   : > { %v1516_v50 = vpop.f32.mrf.mxu1 }
 0x27a   : > { %v879_v51 = vpop.f32.mrf.mxu1 }
 0x27b   : > { %v885_v52 = vsel %vm725_vm3, %v879_v51, -inf }
 0x27c   : > { %886 = vmax.xlane.f32.xlu1 %v885_v52  ;;  %v1527_v53 = vpop.f32.mrf.mxu1 }
 0x27e   : > { %v882_v54 = vpop.f32.mrf.mxu1 }
 0x280   : > { %v1528_v55 = vpop.f32.mrf.mxu1 }
 0x282   : > { %v995_v56 = vpop.f32.mrf.mxu1 }
 0x283   : > { %v1001_v57 = vsel %vm725_vm3, %v995_v56, -inf }
 0x284   : > { %1002 = vmax.xlane.f32.xlu0 %v1001_v57  ;;  %v1539_v58 = vpop.f32.mrf.mxu1  ;;  %v1184_v57 = vld [vmem:[#allocation13 + $0x10] sm:$0xff] }
 0x285   : > { %v1183_v58 = vld [vmem:[#allocation13 + $0x8] sm:$0xff] }
 0x286   : > { %v998_v59 = vpop.f32.mrf.mxu1 }
 0x288   : > { %v1540_v60 = vpop.f32.mrf.mxu1 }
 0x289   : > { %v1182_v60 = vld [vmem:[#allocation13] sm:$0xff] }
 0x28a   : > { %v1111_v61 = vpop.f32.mrf.mxu1 }
 0x28b   : > { %v1117_v62 = vsel %vm725_vm3, %v1111_v61, -inf }
 0x28c   : > { %1118 = vmax.xlane.f32.xlu0 %v1117_v62  ;;  %v1551_v63 = vpop.f32.mrf.mxu1 }
 0x28e   : > { %v1114_v1 = vpop.f32.mrf.mxu1 }
 0x290   : > { %v1552_v2 = vpop.f32.mrf.mxu1 }
 0x292   : > { %v774_v3 = vpop.xlane.xlu0 %773 }
 0x293   : > { %v775_v4 = vsub.f32 %v766_v46, %v774_v3 }
 0x295   : > { %v776_v5 = vmul.f32 1.442695, %v775_v4 }
 0x297   : > { %1683 = vpow2.f32 %v776_v5 }
 0x2a4   : > { %v1684_v6 = vpop.eup %1683 }
 0x2a5   : > { %v778_v7 = vsel %vm725_vm3, %v1684_v6, 0.0 }
 0x2a6   : > { %779 = vadd.xlane.f32.xlu1 %v778_v7 }
 0x2b7   : > { %608 = vrot.lane.b32.xlu1 %v2205_v31, %s1931_s16 }
 0x305   : > { %v887_v8 = vpop.xlane.xlu1 %886 }
 0x306   : > { %v888_v9 = vsub.f32 %v879_v51, %v887_v8  ;;  %v1434_v8 = vld [vmem:[%s2326_s8] ss:$0 sm:$0xff] }
 0x308   : > { %v889_v10 = vmul.f32 1.442695, %v888_v9 }
 0x30a   : > { %1685 = vpow2.f32 %v889_v10 }
 0x30d   : > { %v1003_v11 = vpop.xlane.xlu0 %1002 }
 0x30e   : > { %v1004_v12 = vsub.f32 %v995_v56, %v1003_v11  ;;  %v1185_v56 = vld [vmem:[#allocation13 + $0x18] sm:$0xff] }
 0x30f   : > { %1560 = vmatpush3.msra.mxu1 %v1185_v56 }
 0x310   : > { %v1005_v13 = vmul.f32 1.442695, %v1004_v12  ;;  %1561 = vmatprep.subr.mxu1 %v1928_v0 }
 0x311   : > { %1562 = vmatpush3.msra.mxu1 %v1184_v57 }
 0x312   : > { %1687 = vpow2.f32 %v1005_v13  ;;  %1563 = vmatprep.subr.mxu1 %v1928_v0 }
 0x313   : > { %1564 = vmatpush3.msra.mxu1 %v1183_v58 }
 0x314   : > { %1565 = vmatprep.subr.mxu1 %v1928_v0 }
 0x315   : > { %v1119_v14 = vpop.xlane.xlu0 %1118  ;;  %1566 = vmatpush3.msra.mxu1 %v1182_v60 }
 0x316   : > { %v1120_v15 = vsub.f32 %v1111_v61, %v1119_v14 }
 0x317   : > { %v1686_v16 = vpop.eup %1685 }
 0x318   : > { %v1121_v17 = vmul.f32 1.442695, %v1120_v15  ;;  %v891_v18 = vsel %vm725_vm3, %v1686_v16, 0.0 }
 0x319   : > { %892 = vadd.xlane.f32.xlu0 %v891_v18 }
 0x31a   : > { %1689 = vpow2.f32 %v1121_v17 }
 0x31f   : > { %v1688_v19 = vpop.eup %1687 }
 0x320   : > { %v1007_v20 = vsel %vm725_vm3, %v1688_v19, 0.0 }
 0x321   : > { %1008 = vadd.xlane.f32.xlu1 %v1007_v20 }
 0x327   : > { %v1690_v21 = vpop.eup %1689 }
 0x328   : > { %v1123_v22 = vsel %vm725_vm3, %v1690_v21, 0.0 }
 0x329   : > { %1124 = vadd.xlane.f32.xlu0 %v1123_v22 }
 0x32f   : > { %v780_v23 = vpop.xlane.xlu1 %779 }
 0x330   : > { %1691 = vrcp.f32 %v780_v23 }
 0x332   : > { %628 = vrot.lane.b32.xlu1 %v2205_v31, %s1930_s7 }
 0x333   : > { %v609_v24 = vpop.permute.xlu1 %608 }
 0x334   : > { %612 = vst.msk [vmem:[#allocation3 + $0x4] sm:$0xf] %vm593_vm2, %v609_v24 }
 0x33b   : > { %v835_v27 = vld [vmem:[#allocation3 + $0x4] sm:$0xf] }
 0x33c   : > { %v901_v29 = vsel %vm787_vm4, %v835_v27, 0 }
 0x33d   : > { %v1692_v25 = vpop.eup %1691 }
 0x33e   : > { %v782_v26 = vmul.f32 %v1692_v25, %v1684_v6 }
 0x33f   : > { %618 = vrot.lane.b32.xlu0 %v2205_v31, %s1932_s18  ;;  %s1831_s18 = scalar_lea.vmem %s1283_s5, 128 }
 0x340   : > { %v783_v28 = vpack.c.bf16 %v782_v26, %v782_v26  ;;  %p1832_p1 = scmp.ne.s32.totalorder %s1283_s5, %s1831_s18  ;;  %p1839_p8 = scmp.lt.s32.totalorder %s1837_s24, %s1831_s18 }
 0x342   : > { %1520 = vmatmul.mubr.msk.bf16.vlgmr.msra.gmra.mxu0 %vm725_vm3, %v783_v28  ;;  %p1833_p3 = pnand %p1832_p1, %p2109_p2  ;;  %p1840_p7 = por %p1839_p8, %p1838_p0 }
 0x343   : > { %1530 = vmatpush3.bf16.msra.mxu0 %v901_v29  ;;  %1531 = vmatprep.mubr.msk.bf16.mxu0 %vm1929_vm0, %v1928_v0 }
 0x344   : > { %1541 = vmatprep.subr.bf16.mxu0 %v1928_v0  ;;  %p1834_p5 = pneg %p1833_p3 }
 0x346   : > { %p1841_p9 = pnand %p1840_p7, %p1834_p5 }
 0x3a2   : > { %v893_v30 = vpop.xlane.xlu0 %892 }
 0x3a3   : > { %1693 = vrcp.f32 %v893_v30 }
 0x3aa   : > { %v1009_v32 = vpop.xlane.xlu1 %1008 }
 0x3ab   : > { %1695 = vrcp.f32 %v1009_v32 }
 0x3ae   : > { %v629_v33 = vpop.permute.xlu1 %628 }
 0x3af   : > { %632 = vst.msk [vmem:[#allocation3 + $0xc] sm:$0xf] %vm593_vm2, %v629_v33 }
 0x3b0   : > { %v1694_v31 = vpop.eup %1693 }
 0x3b1   : > { %v895_v34 = vmul.f32 %v1694_v31, %v1686_v16 }
 0x3b2   : > { %v1125_v35 = vpop.xlane.xlu0 %1124 }
 0x3b3   : > { %v896_v36 = vpack.c.bf16 %v895_v34, %v895_v34  ;;  %1697 = vrcp.f32 %v1125_v35 }
 0x3b5   : > { %1532 = vmatmul.mubr.msk.bf16.vlgmr.msra.gmra.mxu0 %vm725_vm3, %v896_v36 }
 0x3b6   : > { %v619_v37 = vpop.permute.xlu0 %618  ;;  %1543 = vmatprep.mubr.msk.bf16.mxu0 %vm1929_vm0, %v1928_v0  ;;  %v1068_v42 = vld [vmem:[#allocation3 + $0xc] sm:$0xf] }
 0x3b7   : > { %622 = vst.msk [vmem:[#allocation3 + $0x8] sm:$0xf] %vm593_vm2, %v619_v37  ;;  %v1133_v45 = vsel %vm787_vm4, %v1068_v42, 0 }
 0x3b8   : > { %v1696_v38 = vpop.eup %1695 }
 0x3b9   : > { %v1011_v39 = vmul.f32 %v1696_v38, %v1688_v19 }
 0x3bb   : > { %v1012_v43 = vpack.c.bf16 %v1011_v39, %v1011_v39 }
 0x3be   : > { %v952_v40 = vld [vmem:[#allocation3 + $0x8] sm:$0xf] }
 0x3bf   : > { %v1017_v41 = vsel %vm787_vm4, %v952_v40, 0 }
 0x3c0   : > { %1542 = vmatpush3.bf16.msra.mxu0 %v1017_v41  ;;  %v1698_v44 = vpop.eup %1697 }
 0x3c1   : > { %1553 = vmatprep.subr.bf16.mxu0 %v1928_v0  ;;  %v1127_v46 = vmul.f32 %v1698_v44, %v1690_v21 }
 0x3c3   : > { %1544 = vmatmul.mubr.msk.bf16.vlgmr.msra.gmra.mxu0 %vm725_vm3, %v1012_v43  ;;  %v1128_v47 = vpack.c.bf16 %v1127_v46, %v1127_v46 }
 0x3c4   : > { %1554 = vmatpush3.bf16.msra.mxu0 %v1133_v45  ;;  %1555 = vmatprep.mubr.msk.bf16.mxu0 %vm1929_vm0, %v1928_v0 }
 0x3cb   : > { %1556 = vmatmul.mubr.msk.bf16.vlgmr.msra.gmra.mxu0 %vm725_vm3, %v1128_v47 }
 0x402   : > { %v825_v48 = vpop.f32.mrf.mxu0 }
 0x403   : > { %831 = vst.msk [vmem:[#allocation4] sm:$0xff] %vm725_vm3, %v825_v48 }
 0x404   : > { %v1521_v49 = vpop.f32.mrf.mxu0 }
 0x406   : > { %v828_v50 = vpop.f32.mrf.mxu0 }
 0x408   : > { %v1522_v51 = vpop.f32.mrf.mxu0 }
 0x475   : > { %v937_v52 = vpop.f32.mrf.mxu0 }
 0x476   : > { %944 = vrot.lane.b32.xlu1 %v937_v52, %s1933_s26 }
 0x477   : > { %v1533_v53 = vpop.f32.mrf.mxu0 }
 0x479   : > { %v940_v54 = vpop.f32.mrf.mxu0 }
 0x47b   : > { %v1534_v55 = vpop.f32.mrf.mxu0 }
 0x483   : > { %v1053_v59 = vpop.f32.mrf.mxu0 }
 0x484   : > { %1060 = vrot.lane.b32.xlu0 %v1053_v59, %s1934_s20 }
 0x485   : > { %v1545_v61 = vpop.f32.mrf.mxu0 }
 0x487   : > { %v1056_v62 = vpop.f32.mrf.mxu0 }
 0x489   : > { %v1546_v63 = vpop.f32.mrf.mxu0 }
 0x48b   : > { %v1169_v1 = vpop.f32.mrf.mxu0 }
 0x48c   : > { %1176 = vrot.lane.b32.xlu1 %v1169_v1, %s1935_s19 }
 0x48d   : > { %v1557_v2 = vpop.f32.mrf.mxu0 }
 0x48f   : > { %v1172_v3 = vpop.f32.mrf.mxu0 }
 0x491   : > { %v1558_v4 = vpop.f32.mrf.mxu0 }
 0x4e8   : > { %v945_v5 = vpop.permute.xlu1 %944 }
 0x4e9   : > { %948 = vst.msk [vmem:[#allocation4] sm:$0xff] %vm947_vm5, %v945_v5 }
 0x4f6   : > { %v1061_v6 = vpop.permute.xlu0 %1060 }
 0x4f7   : > { %1064 = vst.msk [vmem:[#allocation4] sm:$0xff] %vm1063_vm6, %v1061_v6 }
 0x4fe   : > { %v1177_v0 = vpop.permute.xlu1 %1176 }
 0x4ff   : > { %1180 = vst.msk [vmem:[#allocation4] sm:$0xff] %vm1179_vm7, %v1177_v0 }
 0x506   : > { %v1181_v7 = vld [vmem:[#allocation4] sm:$0xff] }
 0x507   : > { %1568 = vmatmul.mubr.msk.f32.vlgmr.msra.gmra.mxu1 %vm437_vm1, %v1181_v7 }
 0x5c7   : > { %v1262_v9 = vpop.f32.mrf.mxu1 }
 0x5c8   : > { %v1263_v10 = vadd.f32 %v1434_v8, %v1262_v9 }
 0x5c9   : > { %v1569_v11 = vpop.f32.mrf.mxu1 }
 0x5ca   : > { %1266 = vst.msk [vmem:[%s419_s1] sm:$0xff] %vm437_vm1, %v1263_v10 }
 0x5cb   : > { %1844 = shalt.err (!%p1841_p9)
}
 0x5cc   : > { %s1845_s21 = scalar_lea.hbm %s2275_s17, 128  ;;  %s1849_s20 = scalar_lea.hbm %s2327_s9, 256 }
 0x5cd   : > { %p1846_p10 = scmp.ne.s32.totalorder %s2275_s17, %s1845_s21  ;;  %p1850_p13 = scmp.lt.s32.totalorder %s2275_s17, %s2327_s9 }
 0x5ce   : > { %p1851_p4 = scmp.lt.s32.totalorder %s1849_s20, %s1845_s21 }
 0x5cf   : > { %p1847_p12 = pnand %p1846_p10, %p2109_p2 }
 0x5d0   : > { %p1852_p11 = por %p1851_p4, %p1850_p13 }
 0x5d1   : > { %p1848_p6 = pneg %p1847_p12 }
 0x5d3   : > { %p1853_p1 = pnand %p1852_p11, %p1848_p6 }
 0x5d5   : > { %1856 = shalt.err (!%p1853_p1)
}
 0x5d6   : > { %1588 = dma.vmem_to_hbm [thread:$0]  (%p2109_p2), %s1283_s5, 128, %s2275_s17, %s1268_s27  }
 0x5d7 PF: > { %s1294_s25 = sand.u32 1, %s1899_s30   ;;  %p2348_p3 = scmp.ne.s32.totalorder %s2346_s29, 0 }
 0x5d8   : > { %p2349_p5 = scmp.ge.s32.totalorder %s1919_s14, 2  ;;  %s1295_s13 = scalar_lea.sflag [#allocation7], %s1294_s25 }
 0x5da   : > { %p1608_p0 = pnand %p2349_p5, %p2348_p3 }
 0x5dc   : > { %p1609_p8 = pneg %p1608_p0 }
 0x5de   : > { %1894 = dma.done.wait (%p1609_p8), %s1295_s13, 128  }
 0x5df   : > { %1896 = vsyncadd (%p1609_p8), %s1295_s13, 4294967168  ;;  %s27_s14 = sadd.s32 1, %s1919_s14   ;;  %s2350_s12 = sld [smem:[#allocation19_spill]] }
 0x5e0   : > { %p24_p7 = scmp.ge.s32.totalorder %s27_s14, 4   ;;  %s2351_s13 = sld [smem:[#allocation20_spill]] }
 0x5e1   : > { %s2352_s30 = smov %s1903_s10  ;;  %s2353_s10 = smov %s1907_s11 }
 0x5e2   : > { %s2354_s11 = smov %s2114_s22  ;;  %26 = sbr.rel (!%p24_p7) target bundleno = 13 (0xd), region = 134 }
 0x5e7   :  { %1300 = vsyncpa [#allocation6], 1 }
 0x5e8   :  { %1302 = vsyncpa [#allocation6 + $0x1], 1 }
 0x5e9   :  { %1303 = vsyncpa [#allocation9], 1 }
 0x5ea   :  { %1304 = vsyncpa [#allocation12], 1 }
 0x5eb   :  { %1305 = vsyncpa [#allocation7], 1 }
 0x5ec   :  { %1307 = vsyncpa [#allocation7 + $0x1], 1 }

</bundles_post_ra>
